<compile_context>
chip_gen: v7x
topology: tpu7x:2x2x1
jax: 0.10.0
libtpu: 0.0.40
codegen_flags: <defaults>
</compile_context>

<pallas_src>
import functools

import jax
import jax.numpy as jnp
from jax.experimental import pallas as pl
from jax.experimental.pallas import tpu as pltpu

IMAGE_SIZE = 256                 # 16 x 16 images
H0, H1, OUT = 100, 50, 10        # logical (PyTorch) feature widths
H0P, H1P, OUTP = 128, 128, 128   # lane-padded widths used inside the kernel


def _round_up(x, m):
    return (x + m - 1) // m * m


def _cdiv(a, b):
    return -(-a // b)


def _pad_to(a, shape, value=0.0):
    pads = [(0, t - s) for s, t in zip(a.shape, shape)]
    return jnp.pad(a, pads, constant_values=value)


def _mlp_kernel(x_ref, w0_ref, b0_ref, w1_ref, b1_ref, w2_ref, b2_ref, o_ref):
    # In-kernel cast to bf16 (hidden under the input DMA); f32 MXU accumulation.
    x = x_ref[...].astype(jnp.bfloat16)
    # fc0 + relu
    h0 = jnp.dot(x, w0_ref[...], preferred_element_type=jnp.float32)
    h0 = jnp.maximum(h0 + b0_ref[...], 0.0)
    # fc1 + relu
    h1 = jnp.dot(h0.astype(jnp.bfloat16), w1_ref[...],
                 preferred_element_type=jnp.float32)
    h1 = jnp.maximum(h1 + b1_ref[...], 0.0)
    # fc2 (logits, lane-padded to OUTP). Padded w2 columns are zero so the
    # matmul contributes exactly 0 in padded lanes; b2's padded lanes are -inf,
    # so the bias add already leaves padded logits at -inf — no in-kernel mask.
    logits = jnp.dot(h1.astype(jnp.bfloat16), w2_ref[...],
                     preferred_element_type=jnp.float32)
    logits = logits + b2_ref[...]
    # Numerically stable log_softmax over the last axis. Row max is always
    # finite (10 real lanes), so -inf padded lanes contribute exp(-inf)=0.
    m = jnp.max(logits, axis=-1, keepdims=True)
    shifted = logits - m
    lse = jnp.log(jnp.sum(jnp.exp(shifted), axis=-1, keepdims=True))
    o_ref[...] = (shifted - lse).astype(o_ref.dtype)


def prepare_params(params):
    """One-time bf16 cast + lane padding of the weights/biases.

    Call once; reuse the returned tuple across forward calls so the six tiny
    pad/convert XLA ops are not relaunched per inference call.
    """
    w0, b0, w1, b1, w2, b2 = params
    w0_p = _pad_to(jnp.asarray(w0, jnp.bfloat16), (IMAGE_SIZE, H0P))
    w1_p = _pad_to(jnp.asarray(w1, jnp.bfloat16), (H0P, H1P))
    w2_p = _pad_to(jnp.asarray(w2, jnp.bfloat16), (H1P, OUTP))
    # Biases stay f32 (v5e VPU/EUP have no bf16) and 2-D for clean broadcast.
    b0_p = _pad_to(b0.reshape(1, H0).astype(jnp.float32), (1, H0P))
    b1_p = _pad_to(b1.reshape(1, H1).astype(jnp.float32), (1, H1P))
    # b2 padded lanes are -inf so padded logits come out of the bias add at -inf.
    b2_p = _pad_to(b2.reshape(1, OUT).astype(jnp.float32), (1, OUTP),
                   value=-jnp.inf)
    return (w0_p, b0_p, w1_p, b1_p, w2_p, b2_p)


@functools.partial(jax.jit,
                   static_argnames=("block_b", "min_grid_steps", "out_dtype"))
def model_b_forward(x, prepared_params, *, block_b=1024, min_grid_steps=2,
                    out_dtype=jnp.float32):
    """x: (B, H, W) or (B, image_size). Returns (B, 10) log-probabilities.

    block_b: batch-tile rows. Sweep 1024-2048 for large batches (VMEM footprint
    at 2048 is ~10 MB — fits every generation incl. v7x's 64 MiB). Tiny batches
    clamp down automatically; the tile is always a multiple of 16.
    min_grid_steps: guarantee this many grid steps when the batch allows it so
    'parallel' can shard across v7x's 2 TensorCores.
    out_dtype: f32 matches PyTorch; bf16 halves output writeback (v5e win).
    """
    w0_p, b0_p, w1_p, b1_p, w2_p, b2_p = prepared_params
    x = x.reshape(-1, IMAGE_SIZE)                      # x.view(-1, image_size)
    B = x.shape[0]

    # Adaptive tile: clamp to the batch, force a multiple of 16 (bf16 sublane),
    # and cap so the grid has >= min_grid_steps steps when the batch allows.
    block = min(block_b, _round_up(B, 16))
    block = max(16, _round_up(block, 16))
    if min_grid_steps > 1 and B >= min_grid_steps * 16:
        block = min(block, _round_up(_cdiv(B, min_grid_steps), 16))
    B_pad = _round_up(B, block)
    grid = (B_pad // block,)

    # Only the ragged tail is padded; x keeps its original dtype (cast is done
    # in-kernel) so no extra HBM copy of x is materialized in the common case.
    if B_pad != B:
        x = jnp.pad(x, ((0, B_pad - B), (0, 0)))

    in_specs = [
        pl.BlockSpec((block, IMAGE_SIZE), lambda i: (i, 0)),   # x: batch-tiled
        pl.BlockSpec((IMAGE_SIZE, H0P), lambda i: (0, 0)),     # weights resident
        pl.BlockSpec((1, H0P), lambda i: (0, 0)),
        pl.BlockSpec((H0P, H1P), lambda i: (0, 0)),
        pl.BlockSpec((1, H1P), lambda i: (0, 0)),
        pl.BlockSpec((H1P, OUTP), lambda i: (0, 0)),
        pl.BlockSpec((1, OUTP), lambda i: (0, 0)),
    ]
    out_spec = pl.BlockSpec((block, OUTP), lambda i: (i, 0))   # lane-dense store

    # Only bump the scoped-VMEM limit if the (double-buffered x/out + f32
    # temporaries + weights) estimate exceeds the default; relevant only when
    # block_b is pushed toward ~4096.
    x_bytes = jnp.dtype(x.dtype).itemsize
    out_bytes = jnp.dtype(out_dtype).itemsize
    vmem_est = (block * (2 * IMAGE_SIZE * x_bytes          # x (double-buffered)
                         + 2 * OUTP * out_bytes            # out (double-buffered)
                         + 3 * 128 * 4)                    # f32 h0/h1/logits temps
                + (1 << 20))                               # weights + slack
    cp_kwargs = dict(dimension_semantics=("parallel",))    # shards steps over TCs
    if vmem_est > 28 * (1 << 20):
        cp_kwargs["vmem_limit_bytes"] = min(int(vmem_est * 3 // 2), 100 * (1 << 20))

    out = pl.pallas_call(
        _mlp_kernel,
        out_shape=jax.ShapeDtypeStruct((B_pad, OUTP), out_dtype),
        grid=grid,
        in_specs=in_specs,
        out_specs=out_spec,
        compiler_params=pltpu.CompilerParams(**cp_kwargs),
    )(x, w0_p, b0_p, w1_p, b1_p, w2_p, b2_p)

    # Strip batch padding and the padded (-inf) logit lanes.
    return out[:B, :OUT]


def init_params(key):
    """Deterministic init mimicking nn.Linear's uniform(-1/sqrt(fan_in), +)."""
    ks = jax.random.split(key, 6)

    def linear(kw, kb, fan_in, fan_out):
        bound = 1.0 / jnp.sqrt(fan_in)
        w = jax.random.uniform(kw, (fan_in, fan_out), jnp.float32, -bound, bound)
        b = jax.random.uniform(kb, (fan_out,), jnp.float32, -bound, bound)
        return w, b

    w0, b0 = linear(ks[0], ks[1], IMAGE_SIZE, H0)
    w1, b1 = linear(ks[2], ks[3], H0, H1)
    w2, b2 = linear(ks[4], ks[5], H1, OUT)
    return (w0, b0, w1, b1, w2, b2)


def reference_forward_f32(x, params):
    """Pure-JAX f32 reference of the PyTorch forward pass."""
    w0, b0, w1, b1, w2, b2 = params
    x = x.reshape(-1, IMAGE_SIZE).astype(jnp.float32)
    h0 = jnp.maximum(x @ w0 + b0, 0.0)
    h1 = jnp.maximum(h0 @ w1 + b1, 0.0)
    logits = h1 @ w2 + b2
    return jax.nn.log_softmax(logits, axis=1)


def reference_forward_bf16(x, params):
    """Pure-JAX reference mirroring the kernel's bf16-operand / f32-accum math."""
    w0, b0, w1, b1, w2, b2 = params
    x = x.reshape(-1, IMAGE_SIZE).astype(jnp.bfloat16)
    h0 = jnp.dot(x, w0.astype(jnp.bfloat16),
                 preferred_element_type=jnp.float32) + b0
    h0 = jnp.maximum(h0, 0.0)
    h1 = jnp.dot(h0.astype(jnp.bfloat16), w1.astype(jnp.bfloat16),
                 preferred_element_type=jnp.float32) + b1
    h1 = jnp.maximum(h1, 0.0)
    logits = jnp.dot(h1.astype(jnp.bfloat16), w2.astype(jnp.bfloat16),
                     preferred_element_type=jnp.float32) + b2
    return jax.nn.log_softmax(logits, axis=1)


if __name__ == "__main__":
    key = jax.random.PRNGKey(0)
    k_param, k_x, k_x2 = jax.random.split(key, 3)

    params = init_params(k_param)
    prepared = prepare_params(params)   # one-time weight cast + lane padding

    # Small deterministic batch: B=8 of 16x16 images.
    x = jax.random.normal(k_x, (8, 16, 16), dtype=jnp.float32)
    out = model_b_forward(x, prepared)
    out = jax.block_until_ready(out)
    assert out.shape == (8, OUT), out.shape

    # Tight check vs a reference that uses the same bf16-operand math.
    ref_bf16 = reference_forward_bf16(x, params)
    assert jnp.allclose(out, ref_bf16, atol=2e-3, rtol=2e-3), float(
        jnp.max(jnp.abs(out - ref_bf16)))

    # Looser sanity check vs the full-f32 PyTorch-equivalent reference
    # (bf16 weight/activation quantization accounts for the gap).
    ref_f32 = reference_forward_f32(x, params)
    assert jnp.allclose(out, ref_f32, atol=5e-2, rtol=5e-2), float(
        jnp.max(jnp.abs(out - ref_f32)))

    # Ragged batch exercises the >=2-grid-step path and tail padding.
    x2 = jax.random.normal(k_x2, (37, 16, 16), dtype=jnp.float32)
    out2 = jax.block_until_ready(model_b_forward(x2, prepared))
    ref2 = reference_forward_bf16(x2, params)
    assert out2.shape == (37, OUT), out2.shape
    assert jnp.allclose(out2, ref2, atol=2e-3, rtol=2e-3), float(
        jnp.max(jnp.abs(out2 - ref2)))

    print("KERNEL_OK")
</pallas_src>

<mosaic_0001>
module attributes {stable_mosaic.version = 11 : i64} {
  func.func @_mlp_kernel(%arg0: i32, %arg1: memref<16x256xf32, #tpu.memory_space<vmem>>, %arg2: memref<256x128xbf16, #tpu.memory_space<vmem>>, %arg3: memref<1x128xf32, #tpu.memory_space<vmem>>, %arg4: memref<128x128xbf16, #tpu.memory_space<vmem>>, %arg5: memref<1x128xf32, #tpu.memory_space<vmem>>, %arg6: memref<128x128xbf16, #tpu.memory_space<vmem>>, %arg7: memref<1x128xf32, #tpu.memory_space<vmem>>, %arg8: memref<16x128xf32, #tpu.memory_space<vmem>>) attributes {dimension_semantics = [#tpu.dimension_semantics<parallel>], iteration_bounds = array<i64: 1>, scalar_prefetch = 0 : i64, scratch_operands = 0 : i64, tpu.core_type = #tpu.core_type<tc>, window_params = [{transform_indices = @transform_0, window_bounds = array<i64: 16, 256>}, {pipeline_mode = #tpu.pipeline_mode<synchronous>, transform_indices = @transform_1, window_bounds = array<i64: 256, 128>}, {pipeline_mode = #tpu.pipeline_mode<synchronous>, transform_indices = @transform_2, window_bounds = array<i64: 1, 128>}, {pipeline_mode = #tpu.pipeline_mode<synchronous>, transform_indices = @transform_3, window_bounds = array<i64: 128, 128>}, {pipeline_mode = #tpu.pipeline_mode<synchronous>, transform_indices = @transform_4, window_bounds = array<i64: 1, 128>}, {pipeline_mode = #tpu.pipeline_mode<synchronous>, transform_indices = @transform_5, window_bounds = array<i64: 128, 128>}, {pipeline_mode = #tpu.pipeline_mode<synchronous>, transform_indices = @transform_6, window_bounds = array<i64: 1, 128>}, {transform_indices = @transform_7, window_bounds = array<i64: 16, 128>}]} {
    %c0 = arith.constant 0 : index
    %c0_0 = arith.constant 0 : index
    %0 = vector.load %arg1[%c0, %c0_0] : memref<16x256xf32, #tpu.memory_space<vmem>>, vector<16x256xf32>
    %1 = arith.truncf %0 : vector<16x256xf32> to vector<16x256xbf16>
    %c0_1 = arith.constant 0 : index
    %c0_2 = arith.constant 0 : index
    %2 = vector.load %arg2[%c0_1, %c0_2] : memref<256x128xbf16, #tpu.memory_space<vmem>>, vector<256x128xbf16>
    %cst = arith.constant dense<0.000000e+00> : vector<16x128xf32>
    %3 = tpu.matmul %1, %2, %cst {dimension_numbers = #tpu.dot_dimension_numbers<[1], [0], [0], [1], [0, 0, 1, 1], [], []>} : vector<16x256xbf16>, vector<256x128xbf16>, vector<16x128xf32> -> vector<16x128xf32>
    %c0_3 = arith.constant 0 : index
    %c0_4 = arith.constant 0 : index
    %4 = vector.load %arg3[%c0_3, %c0_4] : memref<1x128xf32, #tpu.memory_space<vmem>>, vector<1x128xf32>
    %5 = vector.broadcast %4 : vector<1x128xf32> to vector<16x128xf32>
    %6 = arith.addf %3, %5 : vector<16x128xf32>
    %cst_5 = arith.constant 0.000000e+00 : f32
    %7 = vector.broadcast %cst_5 : f32 to vector<16x128xf32>
    %8 = arith.maximumf %6, %7 : vector<16x128xf32>
    %9 = arith.truncf %8 : vector<16x128xf32> to vector<16x128xbf16>
    %c0_6 = arith.constant 0 : index
    %c0_7 = arith.constant 0 : index
    %10 = vector.load %arg4[%c0_6, %c0_7] : memref<128x128xbf16, #tpu.memory_space<vmem>>, vector<128x128xbf16>
    %cst_8 = arith.constant dense<0.000000e+00> : vector<16x128xf32>
    %11 = tpu.matmul %9, %10, %cst_8 {dimension_numbers = #tpu.dot_dimension_numbers<[1], [0], [0], [1], [0, 0, 1, 1], [], []>} : vector<16x128xbf16>, vector<128x128xbf16>, vector<16x128xf32> -> vector<16x128xf32>
    %c0_9 = arith.constant 0 : index
    %c0_10 = arith.constant 0 : index
    %12 = vector.load %arg5[%c0_9, %c0_10] : memref<1x128xf32, #tpu.memory_space<vmem>>, vector<1x128xf32>
    %13 = vector.broadcast %12 : vector<1x128xf32> to vector<16x128xf32>
    %14 = arith.addf %11, %13 : vector<16x128xf32>
    %cst_11 = arith.constant 0.000000e+00 : f32
    %15 = vector.broadcast %cst_11 : f32 to vector<16x128xf32>
    %16 = arith.maximumf %14, %15 : vector<16x128xf32>
    %17 = arith.truncf %16 : vector<16x128xf32> to vector<16x128xbf16>
    %c0_12 = arith.constant 0 : index
    %c0_13 = arith.constant 0 : index
    %18 = vector.load %arg6[%c0_12, %c0_13] : memref<128x128xbf16, #tpu.memory_space<vmem>>, vector<128x128xbf16>
    %cst_14 = arith.constant dense<0.000000e+00> : vector<16x128xf32>
    %19 = tpu.matmul %17, %18, %cst_14 {dimension_numbers = #tpu.dot_dimension_numbers<[1], [0], [0], [1], [0, 0, 1, 1], [], []>} : vector<16x128xbf16>, vector<128x128xbf16>, vector<16x128xf32> -> vector<16x128xf32>
    %c0_15 = arith.constant 0 : index
    %c0_16 = arith.constant 0 : index
    %20 = vector.load %arg7[%c0_15, %c0_16] : memref<1x128xf32, #tpu.memory_space<vmem>>, vector<1x128xf32>
    %21 = vector.broadcast %20 : vector<1x128xf32> to vector<16x128xf32>
    %22 = arith.addf %19, %21 : vector<16x128xf32>
    %cst_17 = arith.constant dense<0xFF800000> : vector<16xf32>
    %23 = vector.multi_reduction <maximumf>, %22, %cst_17 [1] : vector<16x128xf32> to vector<16xf32>
    %24 = vector.shape_cast %23 : vector<16xf32> to vector<16x1xf32>
    %25 = vector.broadcast %24 : vector<16x1xf32> to vector<16x128xf32>
    %26 = arith.subf %22, %25 : vector<16x128xf32>
    %27 = math.exp %26 : vector<16x128xf32>
    %cst_18 = arith.constant dense<0.000000e+00> : vector<16xf32>
    %28 = vector.multi_reduction <add>, %27, %cst_18 [1] : vector<16x128xf32> to vector<16xf32>
    %29 = vector.shape_cast %28 : vector<16xf32> to vector<16x1xf32>
    %30 = math.log %29 : vector<16x1xf32>
    %31 = vector.broadcast %30 : vector<16x1xf32> to vector<16x128xf32>
    %32 = arith.subf %26, %31 : vector<16x128xf32>
    %c0_19 = arith.constant 0 : index
    %c0_20 = arith.constant 0 : index
    %33 = vector.load %arg8[%c0_19, %c0_20] : memref<16x128xf32, #tpu.memory_space<vmem>>, vector<16x128xf32>
    tpu.vector_store %arg8[%c0_19, %c0_20], %32 {strides = array<i32>} : memref<16x128xf32, #tpu.memory_space<vmem>>, vector<16x128xf32>,
    return
  }
  func.func @transform_0(%arg0: i32) -> (i32, i32) {
    %c0_i32 = arith.constant 0 : i32
    %c0_i32_0 = arith.constant 0 : i32
    return %arg0, %c0_i32 : i32, i32
  }
  func.func @transform_1(%arg0: i32) -> (i32, i32) {
    %c0_i32 = arith.constant 0 : i32
    %c0_i32_0 = arith.constant 0 : i32
    %c0_i32_1 = arith.constant 0 : i32
    return %c0_i32, %c0_i32_0 : i32, i32
  }
  func.func @transform_2(%arg0: i32) -> (i32, i32) {
    %c0_i32 = arith.constant 0 : i32
    %c0_i32_0 = arith.constant 0 : i32
    %c0_i32_1 = arith.constant 0 : i32
    return %c0_i32, %c0_i32_0 : i32, i32
  }
  func.func @transform_3(%arg0: i32) -> (i32, i32) {
    %c0_i32 = arith.constant 0 : i32
    %c0_i32_0 = arith.constant 0 : i32
    %c0_i32_1 = arith.constant 0 : i32
    return %c0_i32, %c0_i32_0 : i32, i32
  }
  func.func @transform_4(%arg0: i32) -> (i32, i32) {
    %c0_i32 = arith.constant 0 : i32
    %c0_i32_0 = arith.constant 0 : i32
    %c0_i32_1 = arith.constant 0 : i32
    return %c0_i32, %c0_i32_0 : i32, i32
  }
  func.func @transform_5(%arg0: i32) -> (i32, i32) {
    %c0_i32 = arith.constant 0 : i32
    %c0_i32_0 = arith.constant 0 : i32
    %c0_i32_1 = arith.constant 0 : i32
    return %c0_i32, %c0_i32_0 : i32, i32
  }
  func.func @transform_6(%arg0: i32) -> (i32, i32) {
    %c0_i32 = arith.constant 0 : i32
    %c0_i32_0 = arith.constant 0 : i32
    %c0_i32_1 = arith.constant 0 : i32
    return %c0_i32, %c0_i32_0 : i32, i32
  }
  func.func @transform_7(%arg0: i32) -> (i32, i32) {
    %c0_i32 = arith.constant 0 : i32
    %c0_i32_0 = arith.constant 0 : i32
    return %arg0, %c0_i32 : i32, i32
  }
}

</mosaic_0001>

<bundles_post_ra>
// kernel: model_b_forward.1
= control target key start
LH: loop header
LB: loop body
LE: loop exit
PB: predicated region body
PF: predicated region fallthrough
CT: control target
= control target key end

     0   :  { %12 = vsyncpa [#allocation3], 0  ;;  %s664_s24 = smov [#allocation2]   ;;  %s838_s0 = inlined_call_operand.vmem [shape: f32[16,256], index: 0, kind: input, shape index: {}]   ;;  %s839_s1 = inlined_call_operand.vmem [shape: bf16[256,128], index: 1, kind: input, shape index: {}]   ;;  %s840_s2 = inlined_call_operand.vmem [shape: f32[1,128], index: 2, kind: input, shape index: {}]   ;;  %s841_s3 = inlined_call_operand.vmem [shape: bf16[128,128], index: 3, kind: input, shape index: {}]   ;;  %s842_s4 = inlined_call_operand.vmem [shape: f32[1,128], index: 4, kind: input, shape index: {}]   ;;  %s843_s5 = inlined_call_operand.hbm [shape: bf16[128,128], index: 5, kind: input, shape index: {}]   ;;  %s844_s6 = inlined_call_operand.vmem [shape: f32[1,128], index: 6, kind: input, shape index: {}]   ;;  %s845_s7 = inlined_call_operand.vmem [shape: f32[16,128], index: 7, kind: output, shape index: {}]  }
   0x1   :  { %s28_s25 = sshll.u32 %s664_s24, 4  ;;  %s640_s28 = scalar_lea.hbm %s843_s5, 1024  ;;  %s29_s25 = int_to_ptr.vmem [resolvable:$true] %s28_s25 }
   0x2   :  { %p641_p0 = scmp.ne.s32.totalorder %s843_s5, %s640_s28  ;;  %p644_p1 = scmp.lt.u32.totalorder %s640_s28, %s843_s5 }
   0x4   :  { %p646_p2 = pnand %p644_p1, %p641_p0 }
   0x6   :  { %649 = shalt.err (!%p646_p2)
}
   0x7   :  { %s650_s10 = scalar_lea.vmem %s29_s25, 1024  ;;  %p655_p4 = scmp.lt.s32.totalorder %s29_s25, %s29_s25 }
   0x8   :  { %p651_p3 = scmp.ne.s32.totalorder %s29_s25, %s650_s10  ;;  %p656_p5 = scmp.lt.s32.totalorder %s650_s10, %s650_s10 }
   0xa   :  { %p657_p6 = por %p656_p5, %p655_p4 }
   0xc   :  { %p658_p7 = pnand %p657_p6, %p651_p3 }
   0xe   :  { %661 = shalt.err (!%p658_p7)
}
   0xf   :  { %s665_s11 = smov 64   ;;  %s666_s12 = smov 4  }
  0x10   :  { %34 = dma.hbm_to_vmem [thread:$0]  %s843_s5, 1024, %s29_s25, [#allocation3], %s665_s11, %s665_s11, %s666_s12  }
  0x11   :  { %662 = dma.done.wait [#allocation3], 1024  }
  0x12   :  { %663 = vsyncadd [#allocation3], 4294966272  ;;  %v667_v0 = vmov 0.0   ;;  %v600_v1 = vld [vmem:[%s839_s1 + $0x40] sm:$0xff]   ;;  %v602_v3 = vld [vmem:[%s839_s1 + $0x48] sm:$0xff]   ;;  %vm668_vm0 = vmmov 0  }
  0x13   :  { %555 = vmatprep.subr.bf16.mxu1 %v667_v0  ;;  %v601_v2 = vld [vmem:[%s839_s1] sm:$0xff]   ;;  %515 = vmatprep.subr.bf16.mxu0 %v600_v1  ;;  %v603_v4 = vld [vmem:[%s839_s1 + $0x8] sm:$0xff]   ;;  %v604_v5 = vld [vmem:[%s839_s1 + $0x50] sm:$0xff]  }
  0x14   :  { %516 = vmatpush3.bf16.msra.mxu0 %v601_v2  ;;  %v605_v6 = vld [vmem:[%s839_s1 + $0x10] sm:$0xff]   ;;  %v606_v7 = vld [vmem:[%s839_s1 + $0x58] sm:$0xff]   ;;  %v608_v9 = vld [vmem:[%s839_s1 + $0x60] sm:$0xff]   ;;  %571 = vmatprep.mubr.msk.bf16.mxu1 %vm668_vm0, %v667_v0 }
  0x15   :  { %517 = vmatprep.subr.bf16.mxu0 %v602_v3  ;;  %v607_v8 = vld [vmem:[%s839_s1 + $0x18] sm:$0xff]   ;;  %v609_v10 = vld [vmem:[%s839_s1 + $0x20] sm:$0xff]   ;;  %v610_v11 = vld [vmem:[%s839_s1 + $0x68] sm:$0xff]  }
  0x16   :  { %v42_v12 = vld [vmem:[%s838_s0 + $0x8] sm:$0xff]  ;;  %v44_v13 = vld [vmem:[%s838_s0 + $0x18] sm:$0xff]  ;;  %v616_v16 = vld [vmem:[%s841_s3] sm:$0xff]  }
  0x17   :  { %v611_v14 = vld [vmem:[%s839_s1 + $0x28] sm:$0xff]   ;;  %v46_v15 = vpack.c.bf16 %v44_v13, %v42_v12  ;;  %v612_v17 = vld [vmem:[%s839_s1 + $0x70] sm:$0xff]   ;;  %556 = vmatpush3.bf16.msra.mxu1 %v616_v16  ;;  %v614_v20 = vld [vmem:[%s839_s1 + $0x78] sm:$0xff]  }
  0x18   :  { %518 = vmatpush3.bf16.msra.mxu0 %v603_v4  ;;  %v617_v18 = vld [vmem:[%s841_s3 + $0x8] sm:$0xff]   ;;  %v613_v19 = vld [vmem:[%s839_s1 + $0x30] sm:$0xff]   ;;  %557 = vmatprep.subr.bf16.mxu1 %v667_v0  ;;  %v615_v22 = vld [vmem:[%s839_s1 + $0x38] sm:$0xff]  }
  0x19   :  { %519 = vmatprep.subr.bf16.mxu0 %v604_v5  ;;  %214 = vmatprep.mubr.bf16.mxu0 %v46_v15  ;;  %v618_v21 = vld [vmem:[%s841_s3 + $0x10] sm:$0xff]   ;;  %v41_v23 = vld [vmem:[%s838_s0] sm:$0xff]  ;;  %v619_v25 = vld [vmem:[%s841_s3 + $0x18] sm:$0xff]  }
  0x1a   :  { %v43_v24 = vld [vmem:[%s838_s0 + $0x10] sm:$0xff]  ;;  %v620_v27 = vld [vmem:[%s841_s3 + $0x20] sm:$0xff]   ;;  %v621_v28 = vld [vmem:[%s841_s3 + $0x28] sm:$0xff]  }
  0x1b   :  { %558 = vmatpush3.bf16.msra.mxu1 %v617_v18  ;;  %v45_v26 = vpack.c.bf16 %v43_v24, %v41_v23  ;;  %v622_v29 = vld [vmem:[%s841_s3 + $0x30] sm:$0xff]   ;;  %v623_v30 = vld [vmem:[%s841_s3 + $0x38] sm:$0xff]   ;;  %v624_v31 = vld [vmem:[#allocation2] sm:$0xff]  }
  0x1c   :  { %520 = vmatpush3.bf16.msra.mxu0 %v605_v6  ;;  %559 = vmatprep.subr.bf16.mxu1 %v667_v0  ;;  %v625_v32 = vld [vmem:[#allocation2 + $0x8] sm:$0xff]   ;;  %v626_v33 = vld [vmem:[#allocation2 + $0x10] sm:$0xff]   ;;  %v627_v34 = vld [vmem:[#allocation2 + $0x18] sm:$0xff]  }
  0x1d   :  { %521 = vmatprep.subr.bf16.mxu0 %v606_v7  ;;  %v628_v35 = vld [vmem:[#allocation2 + $0x20] sm:$0xff]   ;;  %v629_v36 = vld [vmem:[#allocation2 + $0x28] sm:$0xff]   ;;  %v630_v49 = vld [vmem:[#allocation2 + $0x30] sm:$0xff]  }
  0x1e   :  { %v480_v38 = vld [vmem:[%s840_s2] ss:$0 sm:$0xff]  ;;  %v631_v50 = vld [vmem:[#allocation2 + $0x38] sm:$0xff]  }
  0x1f   :  { %560 = vmatpush3.bf16.msra.mxu1 %v618_v21  ;;  %v497_v51 = vld [vmem:[%s842_s4] ss:$0 sm:$0xff] }
  0x20   :  { %522 = vmatpush3.bf16.msra.mxu0 %v607_v8  ;;  %561 = vmatprep.subr.bf16.mxu1 %v667_v0  ;;  %v506_v61 = vld [vmem:[%s844_s6] ss:$0 sm:$0xff] }
  0x21   :  { %523 = vmatprep.subr.bf16.mxu0 %v608_v9 }
  0x23   :  { %562 = vmatpush3.bf16.msra.mxu1 %v619_v25 }
  0x24   :  { %524 = vmatpush3.bf16.msra.mxu0 %v609_v10  ;;  %563 = vmatprep.subr.bf16.mxu1 %v667_v0 }
  0x25   :  { %525 = vmatprep.subr.bf16.mxu0 %v610_v11 }
  0x27   :  { %564 = vmatpush3.bf16.msra.mxu1 %v620_v27 }
  0x28   :  { %526 = vmatpush3.bf16.msra.mxu0 %v611_v14  ;;  %565 = vmatprep.subr.bf16.mxu1 %v667_v0 }
  0x29   :  { %527 = vmatprep.subr.bf16.mxu0 %v612_v17 }
  0x2b   :  { %566 = vmatpush3.bf16.msra.mxu1 %v621_v28 }
  0x2c   :  { %528 = vmatpush3.bf16.msra.mxu0 %v613_v19  ;;  %567 = vmatprep.subr.bf16.mxu1 %v667_v0 }
  0x2d   :  { %529 = vmatprep.subr.bf16.mxu0 %v614_v20 }
  0x2f   :  { %568 = vmatpush3.bf16.msra.mxu1 %v622_v29 }
  0x30   :  { %530 = vmatpush3.bf16.msra.mxu0 %v615_v22  ;;  %569 = vmatprep.subr.bf16.mxu1 %v667_v0 }
  0x31   :  { %575 = vmatprep.subr.bf16.mxu0 %v667_v0 }
  0x33   :  { %215 = vmatmul.mubr.bf16.vlgmr.msra.gmra.mrb[0].mxu0 %v45_v26  ;;  %570 = vmatpush3.bf16.msra.mxu1 %v623_v30 }
  0x34   :  { %591 = vmatprep.mubr.msk.bf16.mxu0 %vm668_vm0, %v667_v0  ;;  %576 = vmatpush3.bf16.msra.mxu0 %v624_v31 }
  0x35   :  { %577 = vmatprep.subr.bf16.mxu0 %v667_v0 }
  0x38   :  { %578 = vmatpush3.bf16.msra.mxu0 %v625_v32 }
  0x39   :  { %579 = vmatprep.subr.bf16.mxu0 %v667_v0 }
  0x3c   :  { %580 = vmatpush3.bf16.msra.mxu0 %v626_v33 }
  0x3d   :  { %581 = vmatprep.subr.bf16.mxu0 %v667_v0 }
  0x40   :  { %582 = vmatpush3.bf16.msra.mxu0 %v627_v34 }
  0x41   :  { %583 = vmatprep.subr.bf16.mxu0 %v667_v0 }
  0x44   :  { %584 = vmatpush3.bf16.msra.mxu0 %v628_v35 }
  0x45   :  { %585 = vmatprep.subr.bf16.mxu0 %v667_v0 }
  0x48   :  { %586 = vmatpush3.bf16.msra.mxu0 %v629_v36 }
  0x49   :  { %587 = vmatprep.subr.bf16.mxu0 %v667_v0 }
  0x4c   :  { %588 = vmatpush3.bf16.msra.mxu0 %v630_v49 }
  0x4d   :  { %589 = vmatprep.subr.bf16.mxu0 %v667_v0 }
  0x50   :  { %590 = vmatpush3.bf16.msra.mxu0 %v631_v50 }
 0x106   :  { %v531_v37 = vpop.f32.mrb[0].mxu0 }
 0x107   :  { %v532_v39 = vpop.f32.mrb[1].mxu0 }
 0x108   :  { %v533_v40 = vadd.f32 %v532_v39, %v531_v37  ;;  %v534_v41 = vpop.f32.mrb[2].mxu0 }
 0x109   :  { %v535_v42 = vpop.f32.mrb[3].mxu0 }
 0x10a   :  { %v217_v43 = vadd.f32 %v533_v40, %v480_v38  ;;  %v536_v44 = vadd.f32 %v535_v42, %v534_v41 }
 0x10c   :  { %v220_v45 = vadd.f32 %v536_v44, %v480_v38  ;;  %v223_v46 = vmax.f32 %v217_v43, 0.0 }
 0x10e   :  { %v224_v47 = vmax.f32 %v220_v45, 0.0 }
 0x110   :  { %v225_v48 = vpack.c.bf16 %v224_v47, %v223_v46 }
 0x112   :  { %572 = vmatmul.mubr.bf16.vlgmr.msra.gmra.mrb[0].mxu1 %v225_v48 }
 0x1e5   :  { %v331_v52 = vpop.f32.mrb[0].mxu1 }
 0x1e6   :  { %v332_v53 = vadd.f32 %v497_v51, %v331_v52  ;;  %v573_v54 = vpop.f32.mrb[1].mxu1 }
 0x1e7   :  { %v334_v55 = vpop.f32.mrb[2].mxu1 }
 0x1e8   :  { %v335_v56 = vadd.f32 %v497_v51, %v334_v55  ;;  %v574_v57 = vpop.f32.mrb[3].mxu1  ;;  %v338_v58 = vmax.f32 %v332_v53, 0.0 }
 0x1ea   :  { %v339_v59 = vmax.f32 %v335_v56, 0.0 }
 0x1ec   :  { %v340_v60 = vpack.c.bf16 %v339_v59, %v338_v58 }
 0x1ee   :  { %592 = vmatmul.mubr.bf16.vlgmr.msra.gmra.mrb[4].mxu0 %v340_v60 }
 0x2c1   :  { %v446_v62 = vpop.f32.mrb[4].mxu0 }
 0x2c2   :  { %v447_v63 = vadd.f32 %v506_v61, %v446_v62  ;;  %v593_v0 = vpop.f32.mrb[5].mxu0 }
 0x2c3   :  { %v449_v1 = vpop.f32.mrb[6].mxu0 }
 0x2c4   :  { %453 = vmax.xlane.f32.xlu0 %v447_v63  ;;  %v594_v2 = vpop.f32.mrb[7].mxu0  ;;  %v450_v3 = vadd.f32 %v506_v61, %v449_v1 }
 0x2c8   :  { %455 = vmax.xlane.f32.xlu0 %v450_v3 }
 0x351   :  { %v454_v4 = vpop.xlane.xlu0 %453 }
 0x352   :  { %v457_v5 = vsub.f32 %v447_v63, %v454_v4 }
 0x354   :  { %v459_v6 = vmul.f32 1.442695, %v457_v5 }
 0x355   :  { %v456_v7 = vpop.xlane.xlu0 %455 }
 0x356   :  { %v458_v8 = vsub.f32 %v450_v3, %v456_v7  ;;  %632 = vpow2.f32 %v459_v6 }
 0x358   :  { %v461_v9 = vmul.f32 1.442695, %v458_v8 }
 0x35a   :  { %634 = vpow2.f32 %v461_v9 }
 0x360   :  { %v633_v10 = vpop.eup %632 }
 0x361   :  { %463 = vadd.xlane.f32.xlu1 %v633_v10 }
 0x364   :  { %v635_v11 = vpop.eup %634 }
 0x365   :  { %465 = vadd.xlane.f32.xlu1 %v635_v11 }
 0x3ee   :  { %v464_v12 = vpop.xlane.xlu1 %463 }
 0x3ef   :  { %636 = vlog2.f32 %v464_v12 }
 0x3f2   :  { %v466_v13 = vpop.xlane.xlu1 %465 }
 0x3f3   :  { %638 = vlog2.f32 %v466_v13 }
 0x3f9   :  { %v637_v14 = vpop.eup %636 }
 0x3fa   :  { %v468_v15 = vmul.f32 0.6931472, %v637_v14 }
 0x3fc   :  { %v471_v16 = vsub.f32 %v457_v5, %v468_v15 }
 0x3fd   :  { %v639_v17 = vpop.eup %638 }
 0x3fe   :  { %473 = vst [vmem:[%s845_s7] sm:$0xff] %v471_v16  ;;  %v470_v18 = vmul.f32 0.6931472, %v639_v17 }
 0x400   :  { %v472_v19 = vsub.f32 %v458_v8, %v470_v18 }
 0x402   :  { %474 = vst [vmem:[%s845_s7 + $0x8] sm:$0xff] %v472_v19 }
 0x403   :  { %479 = vsyncpa [#allocation3], 1 }

</bundles_post_ra>
